<compile_context>
chip_gen: v5e
topology: v5e:2x2
jax: 0.10.0
libtpu: 0.0.40
codegen_flags: <defaults>
</compile_context>

<pallas_src>
import math

import jax
import jax.numpy as jnp
from jax.experimental import pallas as pl
from jax.experimental.pallas import tpu as pltpu


_LANE_TILE = 4096            # lane-dense tile for large trailing dims (x128)
_VMEM_TARGET = 44 * 2**20    # per-step live-VMEM target (fits v7x 64 MiB phys)
_VMEM_LIMIT_CAP = 56 * 2**20 # never request a scoped limit above this
_MAX_TB = 256                # cap on samples batched per block


def _largest_divisor_leq(n, cap):
    cap = max(1, min(n, cap))
    for d in range(cap, 0, -1):
        if n % d == 0:
            return d
    return 1


# -----------------------------------------------------------------------------
# Pallas kernel
# -----------------------------------------------------------------------------
def _make_mean_kernel(n_total, tn, ragged_n):
    """Kernel over blocks x:(TB, tn, tm) -> o:(TB, 1, tm), acc:(TB, 1, tm) f32."""
    inv_n = float(1.0 / n_total)

    def kernel(x_ref, o_ref, acc_ref):
        k = pl.program_id(2)          # reduction-axis grid step (last, arbitrary)

        @pl.when(k == 0)
        def _():
            acc_ref[...] = jnp.zeros_like(acc_ref)

        blk = x_ref[...].astype(jnp.float32)
        if ragged_n:
            # Last reduction tile is clipped by Pallas; rows past the array end
            # contain garbage -> mask them to zero before summing.
            valid = n_total - k * tn
            row_id = jax.lax.broadcasted_iota(jnp.int32, (1, tn, 1), 1)
            blk = jnp.where(row_id < valid, blk, 0.0)

        acc_ref[...] += jnp.sum(blk, axis=1, keepdims=True)

        @pl.when(k == pl.num_programs(2) - 1)
        def _():
            o_ref[...] = (acc_ref[...] * inv_n).astype(o_ref.dtype)

    return kernel


# -----------------------------------------------------------------------------
# Wrapper
# -----------------------------------------------------------------------------
def mean_dim1(x, *, vmem_target_bytes=None):
    """Pallas TPU equivalent of torch.Tensor.mean(dim=1).

    x: (B, N, *rest) -> (B, *rest)
    """
    assert x.ndim >= 2, "mean(dim=1) needs at least 2 dims"
    B, N = int(x.shape[0]), int(x.shape[1])
    rest = tuple(int(d) for d in x.shape[2:])
    M = int(math.prod(rest)) if rest else 1
    x3 = x.reshape(B, N, M)

    vmem_target = _VMEM_TARGET if vmem_target_bytes is None else int(vmem_target_bytes)
    itemsize = jnp.dtype(x3.dtype).itemsize
    # Live VMEM bytes per block "row element": double-buffered input plus one
    # f32 temporary for the cast / masked reduce performed in-kernel.
    bytes_per_row_elem = 2 * itemsize + 4

    # ---- lane (M) tiling: no padding, ragged last tile clipped --------------
    if M <= _LANE_TILE:
        tm = M                       # full extent (legal even if not % 128)
    else:
        tm = _LANE_TILE              # lane-dense multiple of 128
    m_blocks = pl.cdiv(M, tm)

    # ---- VMEM-aware row budget (rows of width tm, incl. out/acc rows) -------
    rows_budget = max(9, vmem_target // (tm * bytes_per_row_elem))

    if N + 1 <= rows_budget:
        # Whole reduction axis in one block; batch TB samples per block to
        # amortize per-step overhead when M and N are small.
        tn = N
        n_blocks = 1
        tb = _largest_divisor_leq(B, min(_MAX_TB, rows_budget // (N + 1)))
    else:
        # Large N: keep the lane tile big and tile the reduction axis instead
        # (last grid axis, "arbitrary"), accumulating in f32 scratch.
        tb = 1
        tn = min(N, max(8, ((rows_budget - 1) // 8) * 8))
        n_blocks = pl.cdiv(N, tn)

    b_blocks = B // tb
    ragged_n = (N % tn) != 0

    kernel = _make_mean_kernel(N, tn, ragged_n)

    # Scoped-VMEM limit from the actual live-buffer estimate (+ margin).
    needed = (2 * tb * tn * tm * itemsize      # double-buffered input block
              + 2 * tb * tm * itemsize         # double-buffered output block
              + tb * tm * 4                    # f32 accumulator scratch
              + tb * tn * tm * 4)              # in-kernel f32 temporary
    vmem_limit = int(min(_VMEM_LIMIT_CAP, max(needed + (4 << 20), 32 << 20)))

    out = pl.pallas_call(
        kernel,
        out_shape=jax.ShapeDtypeStruct((B, 1, M), x3.dtype),
        grid=(b_blocks, m_blocks, n_blocks),
        in_specs=[pl.BlockSpec((tb, tn, tm), lambda b, j, k: (b, k, j))],
        out_specs=pl.BlockSpec((tb, 1, tm), lambda b, j, k: (b, 0, j)),
        scratch_shapes=[pltpu.VMEM((tb, 1, tm), jnp.float32)],
        compiler_params=pltpu.CompilerParams(
            dimension_semantics=("parallel", "parallel", "arbitrary"),
            vmem_limit_bytes=vmem_limit),
    )(x3)

    return out.reshape((B,) + rest)


# -----------------------------------------------------------------------------
# Main
# -----------------------------------------------------------------------------
if __name__ == "__main__":
    key = jax.random.PRNGKey(0)
    k1, k2, k3 = jax.random.split(key, 3)

    # 1) Module-consistent small shape: (batch=2, instances=4, 16, 16),
    #    single-block path with TB batching.
    x1 = jax.random.normal(k1, (2, 4, 16, 16), jnp.float32)
    y1 = jax.jit(mean_dim1)(x1)
    jax.block_until_ready(y1)
    r1 = jnp.mean(x1, axis=1)
    assert y1.shape == (2, 16, 16), y1.shape
    assert bool(jnp.all(jnp.isfinite(y1)))
    assert bool(jnp.allclose(y1, r1, atol=1e-5, rtol=1e-5))

    # 2) Force the tiled-reduction (accumulator + ragged-N mask) path with a
    #    tiny VMEM budget, still on a small tensor.
    x2 = jax.random.normal(k2, (2, 37, 8, 48), jnp.float32)
    y2 = jax.jit(lambda a: mean_dim1(a, vmem_target_bytes=64 * 1024))(x2)
    jax.block_until_ready(y2)
    r2 = jnp.mean(x2, axis=1)
    assert y2.shape == (2, 8, 48), y2.shape
    assert bool(jnp.allclose(y2, r2, atol=1e-5, rtol=1e-5))

    # 3) Ragged lane-tile path (M > 4096, last lane tile clipped, no padding).
    x3 = jax.random.normal(k3, (2, 5, 3, 1700), jnp.float32)
    y3 = jax.jit(mean_dim1)(x3)
    jax.block_until_ready(y3)
    r3 = jnp.mean(x3, axis=1)
    assert y3.shape == (2, 3, 1700), y3.shape
    assert bool(jnp.allclose(y3, r3, atol=1e-5, rtol=1e-5))

    print("KERNEL_OK")
</pallas_src>

<mosaic_0001>
module attributes {stable_mosaic.version = 11 : i64} {
  func.func @kernel(%arg0: i32, %arg1: i32, %arg2: i32, %arg3: memref<2x4x256xf32, #tpu.memory_space<vmem>>, %arg4: memref<2x1x256xf32, #tpu.memory_space<vmem>>, %arg5: memref<2x1x256xf32, #tpu.memory_space<vmem>>) attributes {dimension_semantics = [#tpu.dimension_semantics<parallel>, #tpu.dimension_semantics<parallel>, #tpu.dimension_semantics<arbitrary>], iteration_bounds = array<i64: 1, 1, 1>, scalar_prefetch = 0 : i64, scratch_operands = 1 : i64, tpu.core_type = #tpu.core_type<tc>, window_params = [{transform_indices = @transform_0, window_bounds = array<i64: 2, 4, 256>}, {transform_indices = @transform_1, window_bounds = array<i64: 2, 1, 256>}]} {
    %c0_i32 = arith.constant 0 : i32
    %0 = arith.cmpi eq, %arg2, %c0_i32 : i32
    %1 = arith.extui %0 : i1 to i32
    %c0_i32_0 = arith.constant 0 : i32
    %2 = arith.cmpi ne, %1, %c0_i32_0 : i32
    scf.if %2 {
      %cst_11 = arith.constant 0.000000e+00 : f32
      %12 = vector.broadcast %cst_11 : f32 to vector<2x1x256xf32>
      %c0_12 = arith.constant 0 : index
      %c0_13 = arith.constant 0 : index
      %c0_14 = arith.constant 0 : index
      %13 = vector.load %arg5[%c0_12, %c0_13, %c0_14] : memref<2x1x256xf32, #tpu.memory_space<vmem>>, vector<2x1x256xf32>
      tpu.vector_store %arg5[%c0_12, %c0_13, %c0_14], %12 {strides = array<i32>} : memref<2x1x256xf32, #tpu.memory_space<vmem>>, vector<2x1x256xf32>,
    } else {
    }
    %c0 = arith.constant 0 : index
    %c0_1 = arith.constant 0 : index
    %c0_2 = arith.constant 0 : index
    %3 = vector.load %arg3[%c0, %c0_1, %c0_2] : memref<2x4x256xf32, #tpu.memory_space<vmem>>, vector<2x4x256xf32>
    %c0_3 = arith.constant 0 : index
    %c0_4 = arith.constant 0 : index
    %c0_5 = arith.constant 0 : index
    %4 = vector.load %arg5[%c0_3, %c0_4, %c0_5] : memref<2x1x256xf32, #tpu.memory_space<vmem>>, vector<2x1x256xf32>
    %cst = arith.constant dense<0.000000e+00> : vector<2x256xf32>
    %5 = vector.multi_reduction <add>, %3, %cst [1] : vector<2x4x256xf32> to vector<2x256xf32>
    %6 = vector.shape_cast %5 : vector<2x256xf32> to vector<2x1x256xf32>
    %7 = arith.addf %4, %6 : vector<2x1x256xf32>
    %c0_6 = arith.constant 0 : index
    %c0_7 = arith.constant 0 : index
    %c0_8 = arith.constant 0 : index
    %8 = vector.load %arg5[%c0_6, %c0_7, %c0_8] : memref<2x1x256xf32, #tpu.memory_space<vmem>>, vector<2x1x256xf32>
    tpu.vector_store %arg5[%c0_6, %c0_7, %c0_8], %7 {strides = array<i32>} : memref<2x1x256xf32, #tpu.memory_space<vmem>>, vector<2x1x256xf32>,
    %c0_i32_9 = arith.constant 0 : i32
    %9 = arith.cmpi eq, %arg2, %c0_i32_9 : i32
    %10 = arith.extui %9 : i1 to i32
    %c0_i32_10 = arith.constant 0 : i32
    %11 = arith.cmpi ne, %10, %c0_i32_10 : i32
    scf.if %11 {
      %c0_11 = arith.constant 0 : index
      %c0_12 = arith.constant 0 : index
      %c0_13 = arith.constant 0 : index
      %12 = vector.load %arg5[%c0_11, %c0_12, %c0_13] : memref<2x1x256xf32, #tpu.memory_space<vmem>>, vector<2x1x256xf32>
      %cst_14 = arith.constant 2.500000e-01 : f32
      %13 = vector.broadcast %cst_14 : f32 to vector<2x1x256xf32>
      %14 = arith.mulf %12, %13 : vector<2x1x256xf32>
      %c0_15 = arith.constant 0 : index
      %c0_16 = arith.constant 0 : index
      %c0_17 = arith.constant 0 : index
      %15 = vector.load %arg4[%c0_15, %c0_16, %c0_17] : memref<2x1x256xf32, #tpu.memory_space<vmem>>, vector<2x1x256xf32>
      tpu.vector_store %arg4[%c0_15, %c0_16, %c0_17], %14 {strides = array<i32>} : memref<2x1x256xf32, #tpu.memory_space<vmem>>, vector<2x1x256xf32>,
    } else {
    }
    return
  }
  func.func @transform_0(%arg0: i32, %arg1: i32, %arg2: i32) -> (i32, i32, i32) {
    %c0_i32 = arith.constant 0 : i32
    return %arg0, %arg2, %arg1 : i32, i32, i32
  }
  func.func @transform_1(%arg0: i32, %arg1: i32, %arg2: i32) -> (i32, i32, i32) {
    %c0_i32 = arith.constant 0 : i32
    %c0_i32_0 = arith.constant 0 : i32
    return %arg0, %c0_i32, %arg1 : i32, i32, i32
  }
}

</mosaic_0001>

<bundles_post_ra>
// kernel: mean_dim1.1
= control target key start
LH: loop header
LB: loop body
LE: loop exit
PB: predicated region body
PF: predicated region fallthrough
CT: control target
= control target key end

     0   :  { %v12_v0 = vlaneseq  ;;  %v97_v4 = vmov 0.0   ;;  %vm35_vm1 = vcmask 1043456   ;;  %vm70_vm2 = vcmask 1040384   ;;  %s136_s0 = inlined_call_operand.vmem [shape: f32[2,4,256], index: 0, kind: input, shape index: {}]   ;;  %s137_s1 = inlined_call_operand.vmem [shape: f32[2,1,256], index: 1, kind: output, shape index: {}]  }
   0x1   :  { %v18_v1 = vld [vmem:[%s136_s0] sm:$0xff]  ;;  %v19_v2 = vld [vmem:[%s136_s0 + $0x8] sm:$0xff] }
   0x2   :  { %24 = vst [vmem:[#allocation1] ss:$2 sm:$0xff] %v18_v1  ;;  %vm114_vm0 = vcmp.lt.s32.totalorder %v12_v0, 256 }
   0x3   :  { %28 = vst [vmem:[#allocation1 + $0x10] ss:$2 sm:$0xff] %v19_v2 }
   0x4   :  { %16 = vst.msk [vmem:[#allocation2] sm:$0x3] %vm114_vm0, %v97_v4 }
   0x5   :  { %17 = vst.msk [vmem:[#allocation2 + $0x2] sm:$0x3] %vm114_vm0, %v97_v4 }
   0x9   :  { %v25_v5 = vld.sshfl [vmem:[#allocation1] sm:$0xff pattern:$0x75316420]  ;;  %v26_v6 = vld.sshfl [vmem:[#allocation1 + $0x8] sm:$0xff pattern:$0x75316420] }
   0xa   :  { %v36_v7 = vsel %vm35_vm1, %v25_v5, 0.0  ;;  %v43_v8 = vsel %vm35_vm1, %v26_v6, 0.0  ;;  %v29_v9 = vld.sshfl [vmem:[#allocation1 + $0x10] sm:$0xff pattern:$0x75316420] }
   0xb   :  { %v37_v10 = vrot.slane %v36_v7, 4  ;;  %v44_v11 = vrot.slane %v43_v8, 4  ;;  %v50_v12 = vsel %vm35_vm1, %v29_v9, 0.0  ;;  %v30_v13 = vld.sshfl [vmem:[#allocation1 + $0x18] sm:$0xff pattern:$0x75316420] }
   0xc   :  { %v51_v14 = vrot.slane %v50_v12, 4  ;;  %v57_v17 = vsel %vm35_vm1, %v30_v13, 0.0  ;;  %v20_v34 = vld [vmem:[#allocation2] sm:$0x3]  ;;  %v21_v40 = vld [vmem:[#allocation2 + $0x2] sm:$0x3] }
   0xd   :  { %v38_v15 = vadd.f32 %v37_v10, %v36_v7  ;;  %v45_v16 = vadd.f32 %v44_v11, %v43_v8  ;;  %v58_v19 = vrot.slane %v57_v17, 4 }
   0xe   :  { %v52_v18 = vadd.f32 %v51_v14, %v50_v12 }
   0xf   :  { %v39_v20 = vrot.slane %v38_v15, 2  ;;  %v46_v21 = vrot.slane %v45_v16, 2  ;;  %v59_v23 = vadd.f32 %v58_v19, %v57_v17 }
  0x10   :  { %v53_v22 = vrot.slane %v52_v18, 2 }
  0x11   :  { %v40_v24 = vadd.f32 %v39_v20, %v38_v15  ;;  %v47_v25 = vadd.f32 %v46_v21, %v45_v16  ;;  %v60_v27 = vrot.slane %v59_v23, 2 }
  0x12   :  { %v54_v26 = vadd.f32 %v53_v22, %v52_v18 }
  0x13   :  { %v41_v28 = vrot.slane %v40_v24, 1  ;;  %v48_v29 = vrot.slane %v47_v25, 1  ;;  %v61_v30 = vadd.f32 %v60_v27, %v59_v23 }
  0x14   :  { %v55_v32 = vrot.slane %v54_v26, 1 }
  0x15   :  { %v49_v31 = vadd.f32 %v48_v29, %v47_v25  ;;  %v62_v33 = vrot.slane %v61_v30, 1  ;;  %v42_v35 = vadd.f32 %v41_v28, %v40_v24 }
  0x16   :  { %v56_v41 = vadd.f32 %v55_v32, %v54_v26 }
  0x17   :  { %v68_v36 = vrot.slane %v49_v31, 7  ;;  %v63_v37 = vadd.f32 %v62_v33, %v61_v30 }
  0x19   :  { %v71_v38 = vsel %vm70_vm2, %v42_v35, %v68_v36  ;;  %v69_v42 = vrot.slane %v63_v37, 7 }
  0x1a   :  { %v75_v39 = vadd.f32 %v71_v38, %v20_v34 }
  0x1b   :  { %v72_v43 = vsel %vm70_vm2, %v56_v41, %v69_v42 }
  0x1c   :  { %81 = vst.msk [vmem:[#allocation2] sm:$0x3] %vm114_vm0, %v75_v39  ;;  %v76_v44 = vadd.f32 %v72_v43, %v21_v40 }
  0x1e   :  { %82 = vst.msk [vmem:[#allocation2 + $0x2] sm:$0x3] %vm114_vm0, %v76_v44 }
  0x23   :  { %v86_v45 = vld [vmem:[#allocation2] sm:$0x3] }
  0x24   :  { %v88_v46 = vmul.f32 0.25, %v86_v45 }
  0x25   :  { %v87_v47 = vld [vmem:[#allocation2 + $0x2] sm:$0x3] }
  0x26   :  { %90 = vst.msk [vmem:[%s137_s1] sm:$0x3] %vm114_vm0, %v88_v46  ;;  %v89_v48 = vmul.f32 0.25, %v87_v47 }
  0x28   :  { %91 = vst.msk [vmem:[%s137_s1 + $0x2] sm:$0x3] %vm114_vm0, %v89_v48 }

</bundles_post_ra>
